<compile_context>
chip_gen: v7x
topology: tpu7x:2x2x1
jax: 0.10.0
libtpu: 0.0.40
codegen_flags: <defaults>
</compile_context>

<pallas_src>
import functools

import jax
import jax.numpy as jnp
from jax.experimental import pallas as pl
from jax.experimental.pallas import tpu as pltpu

LANE = 128          # lane granule (last dim)
SUBLANE_BF16 = 16   # sublane granule for bf16-packed operands


def _round_up(x: int, m: int) -> int:
    return ((x + m - 1) // m) * m


@functools.lru_cache(maxsize=1)
def _tpu_config():
    """Generation-aware VMEM budget + tile caps (v5e/v6e: 128 MiB, v7x: 64 MiB)."""
    try:
        vmem_cap = int(pltpu.get_tpu_info().vmem_capacity_bytes)
    except Exception:
        vmem_cap = 64 * 1024 * 1024  # conservative (v7x-sized) default
    vmem_limit = min(int(vmem_cap * 3 // 4), 100 * 1024 * 1024)
    if vmem_cap >= 100 * 1024 * 1024:      # v5e / v6e
        m_cap, n_cap, k_cap = 1024, 512, 1024
    else:                                  # v7x (64 MiB) or unknown
        m_cap, n_cap, k_cap = 512, 512, 512
    return vmem_limit, m_cap, n_cap, k_cap


def _pick_dividing_tile(padded: int, granule: int, cap: int) -> int:
    """Largest multiple of `granule` that divides `padded` and is <= cap."""
    t = min(cap, padded)
    t -= t % granule
    while padded % t:
        t -= granule
    return t


def _plan_m(batch: int, cap: int):
    """Pad M to sublane granularity only; split into near-equal tiles <= cap."""
    mp = _round_up(batch, SUBLANE_BF16)
    if mp <= cap:
        return mp, mp
    nblocks = -(-mp // cap)
    tm = _round_up(-(-mp // nblocks), SUBLANE_BF16)
    return tm * nblocks, tm


# ----------------------------- kernels -----------------------------

def linear_small_kernel(x_ref, w_ref, b_ref, o_ref):
    """Whole problem resident in VMEM: one MXU dot + bias. No grid/pipeline."""
    o_ref[...] = (
        jnp.dot(x_ref[...].astype(w_ref.dtype), w_ref[...],
                preferred_element_type=jnp.float32)
        + b_ref[...]
    )


def linear_kernel(x_ref, w_ref, b_ref, o_ref):
    """One (tm, tn) output tile accumulated in place over the K grid axis.

    x_ref: (tm, tk) f32  activation tile (cast to bf16 on the VPU per tile)
    w_ref: (tk, tn) bf16 weight tile, pre-transposed at rest -> plain (M,K)x(K,N)
    b_ref: (1,  tn) f32  bias tile
    o_ref: (tm, tn) f32  output tile; resident across the 'arbitrary' K axis,
                         so it doubles as the accumulator (no scratch needed).
    """
    k = pl.program_id(2)

    @pl.when(k == 0)
    def _init():
        # Bias folded into accumulator init -> added exactly once.
        o_ref[...] = jnp.broadcast_to(b_ref[...], o_ref.shape)

    o_ref[...] += jnp.dot(
        x_ref[...].astype(w_ref.dtype), w_ref[...],
        preferred_element_type=jnp.float32,
    )


# ----------------------------- wrapper -----------------------------

def prepare_linear_params(weight, bias, compute_dtype=jnp.bfloat16):
    """One-time parameter preprocessing (hoisted out of the per-call hot path).

    * transpose PyTorch (nOut, nIn) -> (nIn, nOut) so the kernel needs no
      per-step transpose,
    * pad K/N to lane granularity (128) only,
    * cast the weight to bf16 once, at rest (bias stays f32).
    """
    n_out, n_in = weight.shape
    kp = _round_up(n_in, LANE)
    np_ = _round_up(n_out, LANE)
    w_kn = jnp.zeros((kp, np_), compute_dtype).at[:n_in, :n_out].set(
        weight.T.astype(compute_dtype))
    b_row = jnp.zeros((1, np_), jnp.float32).at[0, :n_out].set(
        bias.astype(jnp.float32))
    return w_kn, b_row


@functools.partial(jax.jit, static_argnames=("n_out",))
def linear_forward(x, w_kn, b_row, *, n_out):
    """y = x @ W.T + b, with (W, b) pre-processed by prepare_linear_params."""
    batch, n_in = x.shape
    kp, np_ = w_kn.shape
    assert kp == _round_up(n_in, LANE) and b_row.shape == (1, np_)

    vmem_limit, m_cap, n_cap, k_cap = _tpu_config()
    mp, tm = _plan_m(batch, m_cap)

    # Pad x only when needed (aligned shapes pass through untouched; the
    # f32 -> bf16 cast happens per-tile inside the kernel, never in HBM).
    if (mp, kp) != (batch, n_in):
        x_p = jnp.zeros((mp, kp), x.dtype).at[:batch, :n_in].set(x)
    else:
        x_p = x

    # ---- tiny-problem fast path: single shot, full-array VMEM blocks ----
    if mp <= 256 and np_ <= 512 and kp <= 512:
        out_p = pl.pallas_call(
            linear_small_kernel,
            out_shape=jax.ShapeDtypeStruct((mp, np_), jnp.float32),
        )(x_p, w_kn, b_row)
        return out_p[:batch, :n_out].astype(x.dtype)

    # ---- tiled path: (M, N, K) grid, K innermost ('arbitrary') ----
    tn = _pick_dividing_tile(np_, LANE, n_cap)
    tk = _pick_dividing_tile(kp, LANE, k_cap)

    # v7x has 2 TensorCores sharing the grid: expose >= 2 blocks along the
    # 'parallel' axes (harmless on single-TC v5e/v6e).
    if (mp // tm) * (np_ // tn) == 1:
        if tn >= 2 * LANE:
            tn //= 2
        elif tm % (2 * SUBLANE_BF16) == 0:
            tm //= 2

    grid = (mp // tm, np_ // tn, kp // tk)
    flops = 2 * mp * np_ * kp
    bytes_accessed = (
        mp * kp * x_p.dtype.itemsize * (np_ // tn)       # x streamed per N block
        + kp * np_ * w_kn.dtype.itemsize * (mp // tm)    # W streamed per M block
        + mp * np_ * 4                                   # output writeback
    )

    out_p = pl.pallas_call(
        linear_kernel,
        out_shape=jax.ShapeDtypeStruct((mp, np_), jnp.float32),
        grid_spec=pltpu.PrefetchScalarGridSpec(
            num_scalar_prefetch=0,
            grid=grid,
            in_specs=[
                pl.BlockSpec((tm, tk), lambda i, j, k: (i, k)),   # x
                pl.BlockSpec((tk, tn), lambda i, j, k: (k, j)),   # W (K, N)
                pl.BlockSpec((1, tn), lambda i, j, k: (0, j)),    # bias
            ],
            out_specs=pl.BlockSpec((tm, tn), lambda i, j, k: (i, j)),
        ),
        compiler_params=pltpu.CompilerParams(
            dimension_semantics=("parallel", "parallel", "arbitrary"),
            vmem_limit_bytes=vmem_limit,
        ),
        cost_estimate=pl.CostEstimate(
            flops=flops, transcendentals=0, bytes_accessed=bytes_accessed),
    )(x_p, w_kn, b_row)

    return out_p[:batch, :n_out].astype(x.dtype)


if __name__ == "__main__":
    key = jax.random.PRNGKey(0)

    # --- 1) Small demo shape implied by the module: nIn=32, nOut=16, batch=8 ---
    B, nIn, nOut = 8, 32, 16
    kx, kw, kb, kx2, kw2, kb2 = jax.random.split(key, 6)

    x = jax.random.normal(kx, (B, nIn), dtype=jnp.float32)
    bound = 1.0 / (nIn ** 0.5)
    weight = jax.random.uniform(kw, (nOut, nIn), jnp.float32, -bound, bound)
    bias = jax.random.uniform(kb, (nOut,), jnp.float32, -bound, bound)

    w_kn, b_row = prepare_linear_params(weight, bias)      # one-time preprocessing
    y = linear_forward(x, w_kn, b_row, n_out=nOut)
    jax.block_until_ready(y)

    y_ref = x @ weight.T + bias
    assert y.shape == (B, nOut)
    assert jnp.allclose(y, y_ref, atol=2e-2, rtol=2e-2), (
        float(jnp.max(jnp.abs(y - y_ref))))

    # --- 2) Exercise the tiled (grid) path with non-tile-multiple shapes ---
    B2, nIn2, nOut2 = 300, 1024, 640
    x2 = jax.random.normal(kx2, (B2, nIn2), dtype=jnp.float32)
    bound2 = 1.0 / (nIn2 ** 0.5)
    weight2 = jax.random.uniform(kw2, (nOut2, nIn2), jnp.float32, -bound2, bound2)
    bias2 = jax.random.uniform(kb2, (nOut2,), jnp.float32, -bound2, bound2)

    w_kn2, b_row2 = prepare_linear_params(weight2, bias2)
    y2 = linear_forward(x2, w_kn2, b_row2, n_out=nOut2)
    jax.block_until_ready(y2)

    y2_ref = x2 @ weight2.T + bias2
    assert y2.shape == (B2, nOut2)
    assert jnp.allclose(y2, y2_ref, atol=2e-2, rtol=2e-2), (
        float(jnp.max(jnp.abs(y2 - y2_ref))))

    print("KERNEL_OK")
</pallas_src>

<mosaic_0001>
module attributes {stable_mosaic.version = 11 : i64} {
  func.func @linear_small_kernel(%arg0: memref<16x128xf32, #tpu.memory_space<vmem>>, %arg1: memref<128x128xbf16, #tpu.memory_space<vmem>>, %arg2: memref<1x128xf32, #tpu.memory_space<vmem>>, %arg3: memref<16x128xf32, #tpu.memory_space<vmem>>) attributes {dimension_semantics = [], scalar_prefetch = 0 : i64, scratch_operands = 0 : i64, tpu.core_type = #tpu.core_type<tc>} {
    %c0 = arith.constant 0 : index
    %c0_0 = arith.constant 0 : index
    %0 = vector.load %arg0[%c0, %c0_0] : memref<16x128xf32, #tpu.memory_space<vmem>>, vector<16x128xf32>
    %1 = arith.truncf %0 : vector<16x128xf32> to vector<16x128xbf16>
    %c0_1 = arith.constant 0 : index
    %c0_2 = arith.constant 0 : index
    %2 = vector.load %arg1[%c0_1, %c0_2] : memref<128x128xbf16, #tpu.memory_space<vmem>>, vector<128x128xbf16>
    %cst = arith.constant dense<0.000000e+00> : vector<16x128xf32>
    %3 = tpu.matmul %1, %2, %cst {dimension_numbers = #tpu.dot_dimension_numbers<[1], [0], [0], [1], [0, 0, 1, 1], [], []>} : vector<16x128xbf16>, vector<128x128xbf16>, vector<16x128xf32> -> vector<16x128xf32>
    %c0_3 = arith.constant 0 : index
    %c0_4 = arith.constant 0 : index
    %4 = vector.load %arg2[%c0_3, %c0_4] : memref<1x128xf32, #tpu.memory_space<vmem>>, vector<1x128xf32>
    %5 = vector.broadcast %4 : vector<1x128xf32> to vector<16x128xf32>
    %6 = arith.addf %3, %5 : vector<16x128xf32>
    %c0_5 = arith.constant 0 : index
    %c0_6 = arith.constant 0 : index
    %7 = vector.load %arg3[%c0_5, %c0_6] : memref<16x128xf32, #tpu.memory_space<vmem>>, vector<16x128xf32>
    tpu.vector_store %arg3[%c0_5, %c0_6], %6 {strides = array<i32>} : memref<16x128xf32, #tpu.memory_space<vmem>>, vector<16x128xf32>,
    return
  }
}

</mosaic_0001>

<bundles_post_ra>
// kernel: linear_forward.1
= control target key start
LH: loop header
LB: loop body
LE: loop exit
PB: predicated region body
PF: predicated region fallthrough
CT: control target
= control target key end

     0   :  { %8 = vsyncpa [#allocation3], 0  ;;  %s226_s12 = smov [#allocation2]   ;;  %s278_s0 = inlined_call_operand.vmem [shape: f32[16,128], index: 0, kind: input, shape index: {}]   ;;  %s279_s1 = inlined_call_operand.hbm [shape: bf16[128,128], index: 1, kind: input, shape index: {}]   ;;  %s280_s2 = inlined_call_operand.vmem [shape: f32[1,128], index: 2, kind: input, shape index: {}]   ;;  %s281_s3 = inlined_call_operand.vmem [shape: f32[16,128], index: 3, kind: output, shape index: {}]  }
   0x1   :  { %s16_s13 = sshll.u32 %s226_s12, 4  ;;  %s202_s16 = scalar_lea.hbm %s279_s1, 1024  ;;  %s17_s13 = int_to_ptr.vmem [resolvable:$true] %s16_s13 }
   0x2   :  { %p203_p0 = scmp.ne.s32.totalorder %s279_s1, %s202_s16  ;;  %p206_p1 = scmp.lt.u32.totalorder %s202_s16, %s279_s1 }
   0x4   :  { %p208_p2 = pnand %p206_p1, %p203_p0 }
   0x6   :  { %211 = shalt.err (!%p208_p2)
}
   0x7   :  { %s212_s21 = scalar_lea.vmem %s17_s13, 1024  ;;  %p217_p4 = scmp.lt.s32.totalorder %s17_s13, %s17_s13 }
   0x8   :  { %p213_p3 = scmp.ne.s32.totalorder %s17_s13, %s212_s21  ;;  %p218_p5 = scmp.lt.s32.totalorder %s212_s21, %s212_s21 }
   0xa   :  { %p219_p6 = por %p218_p5, %p217_p4 }
   0xc   :  { %p220_p7 = pnand %p219_p6, %p213_p3 }
   0xe   :  { %223 = shalt.err (!%p220_p7)
}
   0xf   :  { %s227_s22 = smov 64   ;;  %s228_s23 = smov 4  }
  0x10   :  { %22 = dma.hbm_to_vmem [thread:$0]  %s279_s1, 1024, %s17_s13, [#allocation3], %s227_s22, %s227_s22, %s228_s23  }
  0x11   :  { %224 = dma.done.wait [#allocation3], 1024  }
  0x12   :  { %225 = vsyncadd [#allocation3], 4294966272  ;;  %v229_v0 = vmov 0.0   ;;  %vm230_vm0 = vmmov 0   ;;  %v194_v1 = vld [vmem:[#allocation2] sm:$0xff]   ;;  %v195_v2 = vld [vmem:[#allocation2 + $0x8] sm:$0xff]  }
  0x13   :  { %169 = vmatprep.subr.bf16.mxu0 %v229_v0  ;;  %185 = vmatprep.mubr.msk.bf16.mxu0 %vm230_vm0, %v229_v0  ;;  %v196_v3 = vld [vmem:[#allocation2 + $0x10] sm:$0xff]   ;;  %v197_v4 = vld [vmem:[#allocation2 + $0x18] sm:$0xff]   ;;  %v198_v5 = vld [vmem:[#allocation2 + $0x20] sm:$0xff]  }
  0x14   :  { %170 = vmatpush3.bf16.msra.mxu0 %v194_v1  ;;  %v199_v6 = vld [vmem:[#allocation2 + $0x28] sm:$0xff]   ;;  %v200_v7 = vld [vmem:[#allocation2 + $0x30] sm:$0xff]   ;;  %v201_v8 = vld [vmem:[#allocation2 + $0x38] sm:$0xff]  }
  0x15   :  { %171 = vmatprep.subr.bf16.mxu0 %v229_v0  ;;  %v29_v9 = vld [vmem:[%s278_s0] sm:$0xff]  ;;  %v30_v10 = vld [vmem:[%s278_s0 + $0x8] sm:$0xff] }
  0x16   :  { %v31_v11 = vpack.c.bf16 %v30_v10, %v29_v9  ;;  %v151_v12 = vld [vmem:[%s280_s2] ss:$0 sm:$0xff] }
  0x18   :  { %172 = vmatpush3.bf16.msra.mxu0 %v195_v2 }
  0x19   :  { %173 = vmatprep.subr.bf16.mxu0 %v229_v0 }
  0x1c   :  { %174 = vmatpush3.bf16.msra.mxu0 %v196_v3 }
  0x1d   :  { %175 = vmatprep.subr.bf16.mxu0 %v229_v0 }
  0x20   :  { %176 = vmatpush3.bf16.msra.mxu0 %v197_v4 }
  0x21   :  { %177 = vmatprep.subr.bf16.mxu0 %v229_v0 }
  0x24   :  { %178 = vmatpush3.bf16.msra.mxu0 %v198_v5 }
  0x25   :  { %179 = vmatprep.subr.bf16.mxu0 %v229_v0 }
  0x28   :  { %180 = vmatpush3.bf16.msra.mxu0 %v199_v6 }
  0x29   :  { %181 = vmatprep.subr.bf16.mxu0 %v229_v0 }
  0x2c   :  { %182 = vmatpush3.bf16.msra.mxu0 %v200_v7 }
  0x2d   :  { %183 = vmatprep.subr.bf16.mxu0 %v229_v0 }
  0x30   :  { %184 = vmatpush3.bf16.msra.mxu0 %v201_v8 }
  0x33   :  { %186 = vmatmul.mubr.bf16.vlgmr.msra.gmra.mrb[0].mxu0 %v31_v11 }
 0x106   :  { %v137_v13 = vpop.f32.mrb[0].mxu0 }
 0x107   :  { %v138_v14 = vadd.f32 %v151_v12, %v137_v13  ;;  %v187_v15 = vpop.f32.mrb[1].mxu0 }
 0x108   :  { %v140_v16 = vpop.f32.mrb[2].mxu0 }
 0x109   :  { %144 = vst [vmem:[%s281_s3] sm:$0xff] %v138_v14  ;;  %v141_v17 = vadd.f32 %v151_v12, %v140_v16  ;;  %v188_v18 = vpop.f32.mrb[3].mxu0 }
 0x10b   :  { %145 = vst [vmem:[%s281_s3 + $0x8] sm:$0xff] %v141_v17 }
 0x10c   :  { %150 = vsyncpa [#allocation3], 1 }

</bundles_post_ra>
